<compile_context>
chip_gen: v6e
topology: v6e:2x2x1
jax: 0.10.0
libtpu: 0.0.40
codegen_flags: <defaults>
</compile_context>

<pallas_src>
import functools

import jax
import jax.numpy as jnp
import numpy as np
from jax import lax
from jax.experimental import pallas as pl
from jax.experimental.pallas import tpu as pltpu


def _rfa_kernel(p_ref, a_ref, w1_ref, w1max_ref, w1min_ref, sh1_ref,
                wc_ref, sh2_ref, o_ref, *, ck2, k2_pad):
    p = p_ref[...]                       # (CK2, T)  patches, pixels on lanes
    a = a_ref[...]                       # (2*k2_pad, CK2): [G ; 0 ; W2*bn1_s ; 0]

    # One MXU pass produces BOTH the K2 group-sum (avg-pool numerator) and the
    # depthwise kxk conv (generate_feature) for every pixel lane.
    t = jnp.dot(a, p, preferred_element_type=jnp.float32)     # (2*k2_pad, T)
    pool = t[0:ck2]                      # group-sum of patch  (= K2 * avg-pool)
    fraw = t[k2_pad:k2_pad + ck2]        # depthwise conv, BN1 scale pre-folded

    # Softmax over the K2 receptive-field positions of each input channel.
    # pool is constant within a group, so the per-group max of pool*w1 is
    # pool*max(w1) when pool>=0 else pool*min(w1).  w1/w1max/w1min already
    # carry the 1/K2 avg-pool factor (constant-folded at init).
    wsel = jnp.where(pool >= 0.0, w1max_ref[...], w1min_ref[...])
    e = jnp.exp(pool * (w1_ref[...] - wsel))                   # <= 1, stable
    esum = jnp.dot(a[0:ck2], e.astype(a.dtype),                # group-sum bcast
                   preferred_element_type=jnp.float32)
    soft = e * pl.reciprocal(esum, approx=True)                # softmax over K2

    feat = jnp.maximum(fraw + sh1_ref[...], 0.0)               # BN1 shift + ReLU

    # Final kernel=k / stride=k conv == one matmul over C*K2 (BN2 scale folded).
    acc = jnp.dot(wc_ref[...], (feat * soft).astype(wc_ref.dtype),
                  preferred_element_type=jnp.float32)          # (Osub, T)
    y = acc + sh2_ref[...]                                     # BN2 shift
    o_ref[...] = (y * jax.nn.sigmoid(y)).astype(o_ref.dtype)   # SiLU


def _default_min_grid_steps():
    """v7x has 2 TensorCores per chip -> give each >=2 grid steps.  v5e/v6e
    have a single TC, so shrinking the tile only adds per-step overhead."""
    try:
        name = str(getattr(pltpu.get_tpu_info(), "chip_version", "")).lower()
        if "7" in name:
            return 4
    except Exception:
        pass
    return 1


def _pick_tile(n, tile, min_steps):
    tile = max(128, (int(tile) // 128) * 128)
    tile = min(tile, pl.cdiv(n, 128) * 128)       # never exceed (padded) N
    while tile > 128 and pl.cdiv(n, tile) < min_steps:
        tile = max(128, ((tile // 2) // 128) * 128)
    return tile


def rfaconv_forward(x, kp, kernel_size, tile=1024, min_grid_steps=None,
                    mxu_dtype=None):
    """x: NCHW float32.  kp: kernel-layout params from init_params.
    mxu_dtype=jnp.bfloat16 casts the matmul operands only (recommended on
    v6e/v7x; elementwise/softmax path stays f32).  Returns NCHW output."""
    B, C, H, W = x.shape
    k = kernel_size
    K2 = k * k
    CK2 = C * K2
    pad = k // 2
    O = kp["out_ch"]
    Osub = kp["wc"].shape[0]

    # im2col glue in plain JAX (zero-padded 'same' windows, stride 1),
    # laid out pixels-on-lanes: (C*K2, B*H*W), row index = c*K2 + di*k + dj.
    xp = jnp.pad(x, ((0, 0), (0, 0), (pad, pad), (pad, pad)))
    cols = [xp[:, :, di:di + H, dj:dj + W] for di in range(k) for dj in range(k)]
    P = jnp.stack(cols, axis=0)                                # (K2, B, C, H, W)
    P = P.transpose(2, 0, 1, 3, 4).reshape(CK2, B * H * W)

    N = B * H * W
    if min_grid_steps is None:
        min_grid_steps = _default_min_grid_steps()
    tile = _pick_tile(N, tile, min_grid_steps)
    Np = pl.cdiv(N, tile) * tile
    if Np != N:
        P = jnp.pad(P, ((0, 0), (0, Np - N)))      # explicit zero pad (no inf/NaN)

    A, wc = kp["A"], kp["wc"]
    if mxu_dtype is not None:
        P = P.astype(mxu_dtype)
        A = A.astype(mxu_dtype)
        wc = wc.astype(mxu_dtype)

    # VMEM budget: double-buffered P tile + output tile, plus the constants.
    per_step = 2 * (CK2 * tile * P.dtype.itemsize + Osub * tile * 4)
    consts = 2 * (A.size * A.dtype.itemsize + wc.size * wc.dtype.itemsize
                  + 5 * CK2 * 4 + Osub * 4)
    vmem_limit = int(min(48 * 1024 * 1024,
                         max(32 * 1024 * 1024, 2 * (per_step + consts))))

    kernel = functools.partial(_rfa_kernel, ck2=CK2, k2_pad=kp["k2_pad"])
    out = pl.pallas_call(
        kernel,
        out_shape=jax.ShapeDtypeStruct((Osub, Np), jnp.float32),
        grid=(Np // tile,),
        in_specs=[
            pl.BlockSpec((CK2, tile), lambda i: (0, i)),       # patches (tiled)
            pl.BlockSpec((2 * kp["k2_pad"], CK2), lambda i: (0, 0)),  # [G ; W2]
            pl.BlockSpec((CK2, 1), lambda i: (0, 0)),          # w1 * 1/K2
            pl.BlockSpec((CK2, 1), lambda i: (0, 0)),          # group max(w1)/K2
            pl.BlockSpec((CK2, 1), lambda i: (0, 0)),          # group min(w1)/K2
            pl.BlockSpec((CK2, 1), lambda i: (0, 0)),          # BN1 shift
            pl.BlockSpec((Osub, CK2), lambda i: (0, 0)),       # final conv (BN2 scale folded)
            pl.BlockSpec((Osub, 1), lambda i: (0, 0)),         # BN2 shift
        ],
        out_specs=pl.BlockSpec((Osub, tile), lambda i: (0, i)),
        compiler_params=pltpu.CompilerParams(
            dimension_semantics=("parallel",),
            vmem_limit_bytes=vmem_limit),
    )(P, A, kp["w1"], kp["w1max"], kp["w1min"], kp["bn1_shift"], wc, kp["bn2_shift"])

    out = out[:O, :N]                                          # drop row/col padding
    return out.reshape(O, B, H, W).transpose(1, 0, 2, 3)       # back to NCHW


def init_params(key, C, O, k):
    """Deterministic synthetic parameters in torch layout and kernel layout."""
    K2 = k * k
    CK2 = C * K2
    eps = 1e-5
    ks = jax.random.split(key, 10)
    w1_t = 0.5 * jax.random.normal(ks[0], (CK2, 1, 1, 1), jnp.float32)
    w2_t = (1.0 / k) * jax.random.normal(ks[1], (CK2, 1, k, k), jnp.float32)
    wc_t = (1.0 / (k * np.sqrt(C))) * jax.random.normal(ks[2], (O, C, k, k), jnp.float32)
    g1 = 1.0 + 0.1 * jax.random.normal(ks[3], (CK2,), jnp.float32)
    b1 = 0.1 * jax.random.normal(ks[4], (CK2,), jnp.float32)
    rm1 = 0.05 * jax.random.normal(ks[5], (CK2,), jnp.float32)
    rv1 = 1.0 + 0.1 * jax.random.uniform(ks[6], (CK2,), jnp.float32)
    g2 = 1.0 + 0.1 * jax.random.normal(ks[7], (O,), jnp.float32)
    b2 = 0.1 * jax.random.normal(ks[8], (O,), jnp.float32)
    rm2 = 0.05 * jax.random.normal(ks[9], (O,), jnp.float32)
    rv2 = jnp.ones((O,), jnp.float32)

    torch_params = dict(w1_t=w1_t, w2_t=w2_t, wc_t=wc_t, g1=g1, b1=b1, rm1=rm1,
                        rv1=rv1, g2=g2, b2=b2, rm2=rm2, rv2=rv2, eps=eps)

    # fold BN (eval mode) into scale/shift
    s1 = g1 / jnp.sqrt(rv1 + eps)
    sh1 = b1 - rm1 * s1
    s2 = g2 / jnp.sqrt(rv2 + eps)
    sh2 = b2 - rm2 * s2

    inv_k2 = 1.0 / K2
    # softmax branch vectors: 1/K2 avg-pool factor constant-folded in.
    # NOTE: the gmax sign-trick in the kernel relies on the pooled value being
    # constant within each K2 group; keep this group layout if refactoring.
    w1_flat = w1_t.reshape(CK2)
    w1g = w1_flat.reshape(C, K2)
    w1s = (w1_flat * inv_k2).reshape(CK2, 1)
    w1max = (jnp.repeat(jnp.max(w1g, axis=1), K2) * inv_k2).reshape(CK2, 1)
    w1min = (jnp.repeat(jnp.min(w1g, axis=1), K2) * inv_k2).reshape(CK2, 1)

    gidx = jnp.arange(CK2) // K2
    G = (gidx[:, None] == gidx[None, :]).astype(jnp.float32)   # K2-group ones

    # depthwise kxk conv as a block-diagonal matrix applied from the LEFT,
    # with BN1 scale folded into its rows.
    w2r = w2_t.reshape(C, K2, K2)                              # [c, n(out), m(=di*k+dj)]
    w2bd = jnp.einsum("cnm,cd->cndm", w2r,
                      jnp.eye(C, dtype=jnp.float32)).reshape(CK2, CK2)
    w2s = w2bd * s1[:, None]

    # merged stage-1 matrix: rows [0:CK2] = G, rows [K2pad:K2pad+CK2] = w2s
    # (8-aligned row split so in-kernel slices are vreg-tile aligned).
    k2_pad = ((CK2 + 7) // 8) * 8
    A = jnp.zeros((2 * k2_pad, CK2), jnp.float32)
    A = A.at[:CK2].set(G)
    A = A.at[k2_pad:k2_pad + CK2].set(w2s)

    # final conv applied from the LEFT, BN2 scale folded into its rows;
    # output channels padded to a multiple of 8 sublanes only (not 128 lanes).
    Osub = max(8, ((O + 7) // 8) * 8)
    wcf = wc_t.reshape(O, CK2) * s2[:, None]
    wc_pad = jnp.zeros((Osub, CK2), jnp.float32).at[:O].set(wcf)
    sh2_pad = jnp.zeros((Osub, 1), jnp.float32).at[:O, 0].set(sh2)

    kernel_params = dict(
        A=A,
        w1=w1s,
        w1max=w1max,
        w1min=w1min,
        bn1_shift=sh1.reshape(CK2, 1),
        wc=wc_pad,
        bn2_shift=sh2_pad,
        out_ch=O,
        k2_pad=k2_pad,
    )
    return torch_params, kernel_params


def ref_rfaconv(x, tp, k):
    """Pure-JAX reference mirroring the PyTorch module structure (eval-mode BN)."""
    B, C, H, W = x.shape
    K2 = k * k
    pad = k // 2
    eps = tp["eps"]
    dn = ("NCHW", "OIHW", "NCHW")

    # get_weight: AvgPool2d(k, pad=k//2, stride=1) (count_include_pad) + 1x1 grouped conv
    ssum = lax.reduce_window(x, 0.0, lax.add, (1, 1, k, k), (1, 1, 1, 1),
                             ((0, 0), (0, 0), (pad, pad), (pad, pad)))
    pool = ssum / float(K2)
    weight = lax.conv_general_dilated(pool, tp["w1_t"], (1, 1), "VALID",
                                      feature_group_count=C, dimension_numbers=dn)

    # generate_feature: depthwise kxk grouped conv + BN(eval) + ReLU
    feat = lax.conv_general_dilated(x, tp["w2_t"], (1, 1),
                                    ((pad, pad), (pad, pad)),
                                    feature_group_count=C, dimension_numbers=dn)
    s1 = tp["g1"] / jnp.sqrt(tp["rv1"] + eps)
    feat = feat * s1[None, :, None, None] + (tp["b1"] - tp["rm1"] * s1)[None, :, None, None]
    feat = jnp.maximum(feat, 0.0)

    h, w = weight.shape[2:]
    weighted = jax.nn.softmax(weight.reshape(B, C, K2, h, w), axis=2)
    feature = feat.reshape(B, C, K2, h, w)
    wd = feature * weighted

    # rearrange 'b c (n1 n2) h w -> b c (h n1) (w n2)'
    conv_data = wd.reshape(B, C, k, k, h, w).transpose(0, 1, 4, 2, 5, 3).reshape(B, C, h * k, w * k)

    out = lax.conv_general_dilated(conv_data, tp["wc_t"], (k, k), "VALID",
                                   dimension_numbers=dn)
    s2 = tp["g2"] / jnp.sqrt(tp["rv2"] + eps)
    out = out * s2[None, :, None, None] + (tp["b2"] - tp["rm2"] * s2)[None, :, None, None]
    return out * jax.nn.sigmoid(out)


if __name__ == "__main__":
    B, C, O, H, W, k = 2, 4, 8, 16, 16, 3
    key = jax.random.PRNGKey(0)
    kx, kparam = jax.random.split(key)
    x = jax.random.normal(kx, (B, C, H, W), jnp.float32)

    torch_params, kernel_params = init_params(kparam, C, O, k)

    # f32 MXU operands for the demo (tight comparison tolerance); pass
    # mxu_dtype=jnp.bfloat16 on v6e/v7x for the fast MXU path.
    out = rfaconv_forward(x, kernel_params, k)
    out = jax.block_until_ready(out)
    assert out.shape == (B, O, H, W), out.shape

    ref = jax.block_until_ready(ref_rfaconv(x, torch_params, k))
    # tolerance slightly loosened vs pure-f32 (approx EUP reciprocal in softmax)
    if not np.allclose(np.asarray(out), np.asarray(ref), atol=3e-3, rtol=3e-3):
        err = float(jnp.max(jnp.abs(out - ref)))
        raise AssertionError(f"Pallas kernel mismatch vs reference, max abs err = {err}")

    print("KERNEL_OK")
</pallas_src>

<mosaic_0001>
module attributes {stable_mosaic.version = 11 : i64} {
  func.func @_rfa_kernel(%arg0: i32, %arg1: memref<36x512xf32, #tpu.memory_space<vmem>>, %arg2: memref<80x36xf32, #tpu.memory_space<vmem>>, %arg3: memref<36x1xf32, #tpu.memory_space<vmem>>, %arg4: memref<36x1xf32, #tpu.memory_space<vmem>>, %arg5: memref<36x1xf32, #tpu.memory_space<vmem>>, %arg6: memref<36x1xf32, #tpu.memory_space<vmem>>, %arg7: memref<8x36xf32, #tpu.memory_space<vmem>>, %arg8: memref<8x1xf32, #tpu.memory_space<vmem>>, %arg9: memref<8x512xf32, #tpu.memory_space<vmem>>) attributes {dimension_semantics = [#tpu.dimension_semantics<parallel>], iteration_bounds = array<i64: 1>, scalar_prefetch = 0 : i64, scratch_operands = 0 : i64, tpu.core_type = #tpu.core_type<tc>, window_params = [{transform_indices = @transform_0, window_bounds = array<i64: 36, 512>}, {pipeline_mode = #tpu.pipeline_mode<synchronous>, transform_indices = @transform_1, window_bounds = array<i64: 80, 36>}, {pipeline_mode = #tpu.pipeline_mode<synchronous>, transform_indices = @transform_2, window_bounds = array<i64: 36, 1>}, {pipeline_mode = #tpu.pipeline_mode<synchronous>, transform_indices = @transform_3, window_bounds = array<i64: 36, 1>}, {pipeline_mode = #tpu.pipeline_mode<synchronous>, transform_indices = @transform_4, window_bounds = array<i64: 36, 1>}, {pipeline_mode = #tpu.pipeline_mode<synchronous>, transform_indices = @transform_5, window_bounds = array<i64: 36, 1>}, {pipeline_mode = #tpu.pipeline_mode<synchronous>, transform_indices = @transform_6, window_bounds = array<i64: 8, 36>}, {pipeline_mode = #tpu.pipeline_mode<synchronous>, transform_indices = @transform_7, window_bounds = array<i64: 8, 1>}, {transform_indices = @transform_8, window_bounds = array<i64: 8, 512>}]} {
    %c0 = arith.constant 0 : index
    %c0_0 = arith.constant 0 : index
    %0 = vector.load %arg1[%c0, %c0_0] : memref<36x512xf32, #tpu.memory_space<vmem>>, vector<36x512xf32>
    %c0_1 = arith.constant 0 : index
    %c0_2 = arith.constant 0 : index
    %1 = vector.load %arg2[%c0_1, %c0_2] : memref<80x36xf32, #tpu.memory_space<vmem>>, vector<80x36xf32>
    %cst = arith.constant dense<0.000000e+00> : vector<80x512xf32>
    %2 = tpu.matmul %1, %0, %cst {dimension_numbers = #tpu.dot_dimension_numbers<[1], [0], [0], [1], [0, 0, 1, 1], [], []>} : vector<80x36xf32>, vector<36x512xf32>, vector<80x512xf32> -> vector<80x512xf32>
    %3 = vector.extract_strided_slice %2 {offsets = [0, 0], sizes = [36, 512], strides = [1, 1]} : vector<80x512xf32> to vector<36x512xf32>
    %4 = vector.extract_strided_slice %2 {offsets = [40, 0], sizes = [36, 512], strides = [1, 1]} : vector<80x512xf32> to vector<36x512xf32>
    %cst_3 = arith.constant 0.000000e+00 : f32
    %5 = vector.broadcast %cst_3 : f32 to vector<36x512xf32>
    %6 = arith.cmpf oge, %3, %5 : vector<36x512xf32>
    %c0_4 = arith.constant 0 : index
    %c0_5 = arith.constant 0 : index
    %7 = vector.load %arg4[%c0_4, %c0_5] : memref<36x1xf32, #tpu.memory_space<vmem>>, vector<36x1xf32>
    %c0_6 = arith.constant 0 : index
    %c0_7 = arith.constant 0 : index
    %8 = vector.load %arg5[%c0_6, %c0_7] : memref<36x1xf32, #tpu.memory_space<vmem>>, vector<36x1xf32>
    %9 = vector.shape_cast %7 : vector<36x1xf32> to vector<36x1xf32>
    %10 = vector.broadcast %9 : vector<36x1xf32> to vector<36x512xf32>
    %11 = vector.shape_cast %8 : vector<36x1xf32> to vector<36x1xf32>
    %12 = vector.broadcast %11 : vector<36x1xf32> to vector<36x512xf32>
    %13 = arith.select %6, %10, %12 : vector<36x512xi1>, vector<36x512xf32>
    %c0_8 = arith.constant 0 : index
    %c0_9 = arith.constant 0 : index
    %14 = vector.load %arg3[%c0_8, %c0_9] : memref<36x1xf32, #tpu.memory_space<vmem>>, vector<36x1xf32>
    %15 = vector.broadcast %14 : vector<36x1xf32> to vector<36x512xf32>
    %16 = arith.subf %15, %13 : vector<36x512xf32>
    %17 = arith.mulf %3, %16 : vector<36x512xf32>
    %18 = math.exp %17 : vector<36x512xf32>
    %19 = vector.extract_strided_slice %1 {offsets = [0, 0], sizes = [36, 36], strides = [1, 1]} : vector<80x36xf32> to vector<36x36xf32>
    %cst_10 = arith.constant dense<0.000000e+00> : vector<36x512xf32>
    %20 = tpu.matmul %19, %18, %cst_10 {dimension_numbers = #tpu.dot_dimension_numbers<[1], [0], [0], [1], [0, 0, 1, 1], [], []>} : vector<36x36xf32>, vector<36x512xf32>, vector<36x512xf32> -> vector<36x512xf32>
    %21 = tpu.reciprocal %20 {approx = true} : vector<36x512xf32> -> vector<36x512xf32>
    %22 = arith.mulf %18, %21 : vector<36x512xf32>
    %c0_11 = arith.constant 0 : index
    %c0_12 = arith.constant 0 : index
    %23 = vector.load %arg6[%c0_11, %c0_12] : memref<36x1xf32, #tpu.memory_space<vmem>>, vector<36x1xf32>
    %24 = vector.broadcast %23 : vector<36x1xf32> to vector<36x512xf32>
    %25 = arith.addf %4, %24 : vector<36x512xf32>
    %cst_13 = arith.constant 0.000000e+00 : f32
    %26 = vector.broadcast %cst_13 : f32 to vector<36x512xf32>
    %27 = arith.maximumf %25, %26 : vector<36x512xf32>
    %c0_14 = arith.constant 0 : index
    %c0_15 = arith.constant 0 : index
    %28 = vector.load %arg7[%c0_14, %c0_15] : memref<8x36xf32, #tpu.memory_space<vmem>>, vector<8x36xf32>
    %29 = arith.mulf %27, %22 : vector<36x512xf32>
    %cst_16 = arith.constant dense<0.000000e+00> : vector<8x512xf32>
    %30 = tpu.matmul %28, %29, %cst_16 {dimension_numbers = #tpu.dot_dimension_numbers<[1], [0], [0], [1], [0, 0, 1, 1], [], []>} : vector<8x36xf32>, vector<36x512xf32>, vector<8x512xf32> -> vector<8x512xf32>
    %c0_17 = arith.constant 0 : index
    %c0_18 = arith.constant 0 : index
    %31 = vector.load %arg8[%c0_17, %c0_18] : memref<8x1xf32, #tpu.memory_space<vmem>>, vector<8x1xf32>
    %32 = vector.broadcast %31 : vector<8x1xf32> to vector<8x512xf32>
    %33 = arith.addf %30, %32 : vector<8x512xf32>
    %34 = arith.negf %33 : vector<8x512xf32>
    %35 = math.exp %34 : vector<8x512xf32>
    %cst_19 = arith.constant 1.000000e+00 : f32
    %36 = vector.broadcast %cst_19 : f32 to vector<8x512xf32>
    %37 = arith.addf %36, %35 : vector<8x512xf32>
    %38 = arith.divf %36, %37 : vector<8x512xf32>
    %39 = arith.mulf %33, %38 : vector<8x512xf32>
    %c0_20 = arith.constant 0 : index
    %c0_21 = arith.constant 0 : index
    %40 = vector.load %arg9[%c0_20, %c0_21] : memref<8x512xf32, #tpu.memory_space<vmem>>, vector<8x512xf32>
    tpu.vector_store %arg9[%c0_20, %c0_21], %39 {strides = array<i32>} : memref<8x512xf32, #tpu.memory_space<vmem>>, vector<8x512xf32>,
    return
  }
  func.func @transform_0(%arg0: i32) -> (i32, i32) {
    %c0_i32 = arith.constant 0 : i32
    %c0_i32_0 = arith.constant 0 : i32
    return %c0_i32, %arg0 : i32, i32
  }
  func.func @transform_1(%arg0: i32) -> (i32, i32) {
    %c0_i32 = arith.constant 0 : i32
    %c0_i32_0 = arith.constant 0 : i32
    %c0_i32_1 = arith.constant 0 : i32
    return %c0_i32, %c0_i32_0 : i32, i32
  }
  func.func @transform_2(%arg0: i32) -> (i32, i32) {
    %c0_i32 = arith.constant 0 : i32
    %c0_i32_0 = arith.constant 0 : i32
    %c0_i32_1 = arith.constant 0 : i32
    return %c0_i32, %c0_i32_0 : i32, i32
  }
  func.func @transform_3(%arg0: i32) -> (i32, i32) {
    %c0_i32 = arith.constant 0 : i32
    %c0_i32_0 = arith.constant 0 : i32
    %c0_i32_1 = arith.constant 0 : i32
    return %c0_i32, %c0_i32_0 : i32, i32
  }
  func.func @transform_4(%arg0: i32) -> (i32, i32) {
    %c0_i32 = arith.constant 0 : i32
    %c0_i32_0 = arith.constant 0 : i32
    %c0_i32_1 = arith.constant 0 : i32
    return %c0_i32, %c0_i32_0 : i32, i32
  }
  func.func @transform_5(%arg0: i32) -> (i32, i32) {
    %c0_i32 = arith.constant 0 : i32
    %c0_i32_0 = arith.constant 0 : i32
    %c0_i32_1 = arith.constant 0 : i32
    return %c0_i32, %c0_i32_0 : i32, i32
  }
  func.func @transform_6(%arg0: i32) -> (i32, i32) {
    %c0_i32 = arith.constant 0 : i32
    %c0_i32_0 = arith.constant 0 : i32
    %c0_i32_1 = arith.constant 0 : i32
    return %c0_i32, %c0_i32_0 : i32, i32
  }
  func.func @transform_7(%arg0: i32) -> (i32, i32) {
    %c0_i32 = arith.constant 0 : i32
    %c0_i32_0 = arith.constant 0 : i32
    %c0_i32_1 = arith.constant 0 : i32
    return %c0_i32, %c0_i32_0 : i32, i32
  }
  func.func @transform_8(%arg0: i32) -> (i32, i32) {
    %c0_i32 = arith.constant 0 : i32
    %c0_i32_0 = arith.constant 0 : i32
    return %c0_i32, %arg0 : i32, i32
  }
}

</mosaic_0001>

<bundles_post_ra>
// kernel: tpu_custom_call.1
= control target key start
LH: loop header
LB: loop body
LE: loop exit
PB: predicated region body
PF: predicated region fallthrough
CT: control target
= control target key end

     0   :  { %vm91_vm0 = vcmask 1043456   ;;  %vm60_vm1 = vcmask 293888   ;;  %v1277_v21 = vmov 0.0   ;;  %v1278_v25 = vmov 0   ;;  %s1893_s0 = inlined_call_operand.vmem [shape: f32[36,512], index: 0, kind: input, shape index: {}]   ;;  %s1894_s1 = inlined_call_operand.vmem [shape: f32[80,36], index: 1, kind: input, shape index: {}]   ;;  %s1895_s2 = inlined_call_operand.vmem [shape: f32[36,1], index: 2, kind: input, shape index: {}]   ;;  %s1896_s3 = inlined_call_operand.vmem [shape: f32[36,1], index: 3, kind: input, shape index: {}]   ;;  %s1897_s4 = inlined_call_operand.vmem [shape: f32[36,1], index: 4, kind: input, shape index: {}]   ;;  %s1898_s5 = inlined_call_operand.vmem [shape: f32[36,1], index: 5, kind: input, shape index: {}]   ;;  %s1899_s6 = inlined_call_operand.vmem [shape: f32[8,36], index: 6, kind: input, shape index: {}]   ;;  %s1900_s7 = inlined_call_operand.vmem [shape: f32[8,1], index: 7, kind: input, shape index: {}]   ;;  %s1901_s8 = inlined_call_operand.hbm [shape: f32[8,512], index: 8, kind: output, shape index: {}]  }
   0x1   :  { %v47_v0 = vld [vmem:[%s1893_s0 + $0x88] sm:$0xf]  ;;  %v49_v1 = vld [vmem:[%s1893_s0 + $0x98] sm:$0xf]  ;;  %v46_v3 = vld [vmem:[%s1893_s0 + $0x80] sm:$0xf]  ;;  %168 = vmatprep.mubr.f32.mxu0 %v1277_v21  ;;  %293 = vmatprep.mubr.f32.mxu1 %v1277_v21 }
   0x2   :  { %v43_v2 = vld [vmem:[%s1893_s0 + $0x68] sm:$0xff]  ;;  %1106 = vmatprep.subr.msk.mxu0 %vm91_vm0, %v47_v0  ;;  %1118 = vmatprep.subr.msk.mxu1 %vm91_vm0, %v49_v1  ;;  %v48_v4 = vld [vmem:[%s1893_s0 + $0x90] sm:$0xf]  ;;  %v45_v5 = vld [vmem:[%s1893_s0 + $0x78] sm:$0xff] }
   0x3   :  { %1107 = vmatpush1.msk.msra.mxu0 %vm91_vm0, %v46_v3  ;;  %1119 = vmatpush1.msk.msra.mxu1 %vm91_vm0, %v48_v4  ;;  %v42_v6 = vld [vmem:[%s1893_s0 + $0x60] sm:$0xff]  ;;  %v44_v7 = vld [vmem:[%s1893_s0 + $0x70] sm:$0xff]  ;;  %v39_v8 = vld [vmem:[%s1893_s0 + $0x48] sm:$0xff] }
   0x4   :  { %128 = vmatprep.subr.mxu0 %v43_v2  ;;  %253 = vmatprep.subr.mxu1 %v45_v5  ;;  %v41_v9 = vld [vmem:[%s1893_s0 + $0x58] sm:$0xff]  ;;  %v38_v10 = vld [vmem:[%s1893_s0 + $0x40] sm:$0xff]  ;;  %v40_v11 = vld [vmem:[%s1893_s0 + $0x50] sm:$0xff] }
   0x5   :  { %129 = vmatpush1.msra.mxu0 %v42_v6  ;;  %254 = vmatpush1.msra.mxu1 %v44_v7  ;;  %v35_v12 = vld [vmem:[%s1893_s0 + $0x28] sm:$0xff]  ;;  %v37_v13 = vld [vmem:[%s1893_s0 + $0x38] sm:$0xff]  ;;  %v34_v14 = vld [vmem:[%s1893_s0 + $0x20] sm:$0xff] }
   0x6   :  { %130 = vmatprep.subr.mxu0 %v39_v8  ;;  %255 = vmatprep.subr.mxu1 %v41_v9  ;;  %v36_v15 = vld [vmem:[%s1893_s0 + $0x30] sm:$0xff]  ;;  %v31_v16 = vld [vmem:[%s1893_s0 + $0x8] sm:$0xff]  ;;  %v33_v17 = vld [vmem:[%s1893_s0 + $0x18] sm:$0xff] }
   0x7   :  { %131 = vmatpush1.msra.mxu0 %v38_v10  ;;  %256 = vmatpush1.msra.mxu1 %v40_v11  ;;  %v30_v18 = vld [vmem:[%s1893_s0] sm:$0xff]  ;;  %v32_v19 = vld [vmem:[%s1893_s0 + $0x10] sm:$0xff]  ;;  %v1411_v24 = vld [vmem:[%s1894_s1 + $0x8] sm:$0xff] }
   0x8   :  { %132 = vmatprep.subr.mxu0 %v35_v12  ;;  %257 = vmatprep.subr.mxu1 %v37_v13  ;;  %v1392_v20 = vld [vmem:[%s1894_s1] sm:$0xff]  ;;  %v377_v27 = vld [vmem:[%s1896_s3 + $0x18] sm:$0xff]  ;;  %v1428_v28 = vld [vmem:[%s1894_s1 + $0x10] sm:$0xff] }
   0x9   :  { %133 = vmatpush1.msra.mxu0 %v34_v14  ;;  %258 = vmatpush1.msra.mxu1 %v36_v15  ;;  %v378_v22 = vld [vmem:[%s1896_s3 + $0x20] sm:$0xf] }
   0xa   :  { %134 = vmatprep.subr.mxu0 %v31_v16  ;;  %259 = vmatprep.subr.mxu1 %v33_v17  ;;  %v458_v23 = vld [vmem:[%s1895_s2 + $0x20] sm:$0xf] }
   0xb   :  { %135 = vmatpush1.msra.mxu0 %v30_v18  ;;  %260 = vmatpush1.msra.mxu1 %v32_v19  ;;  %v383_v26 = vld [vmem:[%s1897_s4 + $0x20] sm:$0xf] }
   0xc   :  { %1108 = vmatmul.mubr.msk.f32.vlgmr.msra.gmra.mxu0 %vm60_vm1, %v1392_v20  ;;  %1120 = vmatmul.mubr.msk.f32.vlgmr.msra.gmra.mxu1 %vm60_vm1, %v1392_v20 }
   0xd   :  { %174 = vmatprep.mubr.f32.mxu0 %v1277_v21  ;;  %299 = vmatprep.mubr.f32.mxu1 %v1277_v21 }
   0xe   :  { %1157 = vset.pattern.permute.xlu0 %v1278_v25  ;;  %1158 = vset.pattern.permute.xlu1 %v1278_v25 }
   0xf   :  { %406 = vperm.xlu0 %1157, %v378_v22   ;;  %481 = vperm.xlu1 %1158, %v458_v23  }
  0x10   :  { %1109 = vmatmul.mubr.msk.f32.gmra.mxu0 %vm60_vm1, %v1411_v24  ;;  %1121 = vmatmul.mubr.msk.f32.gmra.mxu1 %vm60_vm1, %v1411_v24 }
  0x11   :  { %180 = vmatprep.mubr.f32.mxu0 %v1277_v21  ;;  %305 = vmatprep.mubr.f32.mxu1 %v1277_v21 }
  0x12   :  { %13 = vsyncpa [#allocation3], 0  ;;  %v382_v29 = vld [vmem:[%s1897_s4 + $0x18] sm:$0xff]  ;;  %v376_v32 = vld [vmem:[%s1896_s3 + $0x10] sm:$0xff] }
  0x13   :  { %431 = vperm.xlu0 %1157, %v383_v26   ;;  %401 = vperm.xlu1 %1158, %v377_v27   ;;  %v457_v30 = vld [vmem:[%s1895_s2 + $0x18] sm:$0xff]  ;;  %v381_v33 = vld [vmem:[%s1897_s4 + $0x10] sm:$0xff]  ;;  %v1462_v34 = vld [vmem:[%s1894_s1 + $0x20] sm:$0xff] }
  0x14   :  { %1110 = vmatmul.mubr.msk.f32.gmra.mxu0 %vm60_vm1, %v1428_v28  ;;  %1122 = vmatmul.mubr.msk.f32.gmra.mxu1 %vm60_vm1, %v1428_v28  ;;  %v1445_v31 = vld [vmem:[%s1894_s1 + $0x18] sm:$0xff]  ;;  %v456_v35 = vld [vmem:[%s1895_s2 + $0x10] sm:$0xff]  ;;  %v375_v36 = vld [vmem:[%s1896_s3 + $0x8] sm:$0xff] }
  0x15   :  { %186 = vmatprep.mubr.f32.mxu0 %v1277_v21  ;;  %311 = vmatprep.mubr.f32.mxu1 %v1277_v21  ;;  %v55_v37 = vld [vmem:[%s1894_s1 + $0x28] sm:$0xff]  ;;  %v56_v40 = vld [vmem:[%s1894_s1 + $0x30] sm:$0xff]  ;;  %v374_v41 = vld [vmem:[%s1896_s3] sm:$0xff] }
  0x16   :  { %v380_v38 = vld [vmem:[%s1897_s4 + $0x8] sm:$0xff]  ;;  %v379_v42 = vld [vmem:[%s1897_s4] sm:$0xff]  ;;  %v57_v43 = vld [vmem:[%s1894_s1 + $0x38] sm:$0xff] }
  0x17   :  { %426 = vperm.xlu0 %1157, %v382_v29   ;;  %476 = vperm.xlu1 %1158, %v457_v30   ;;  %v455_v39 = vld [vmem:[%s1895_s2 + $0x8] sm:$0xff]  ;;  %v454_v44 = vld [vmem:[%s1895_s2] sm:$0xff]  ;;  %v809_v47 = vld [vmem:[%s1898_s5 + $0x18] sm:$0xff] }
  0x18   :  { %1111 = vmatmul.mubr.msk.f32.gmra.mxu0 %vm60_vm1, %v1445_v31  ;;  %1123 = vmatmul.mubr.msk.f32.gmra.mxu1 %vm60_vm1, %v1445_v31  ;;  %v810_v45 = vld [vmem:[%s1898_s5 + $0x20] sm:$0xf]  ;;  %v808_v48 = vld [vmem:[%s1898_s5 + $0x10] sm:$0xff]  ;;  %v59_v49 = vld [vmem:[%s1894_s1 + $0x48] sm:$0xff] }
  0x19   :  { %192 = vmatprep.mubr.f32.mxu0 %v1277_v21  ;;  %317 = vmatprep.mubr.f32.mxu1 %v1277_v21  ;;  %v58_v46 = vld [vmem:[%s1894_s1 + $0x40] sm:$0xff]  ;;  %v807_v50 = vld [vmem:[%s1898_s5 + $0x8] sm:$0xff] }
  0x1a   :  { %v806_v51 = vld [vmem:[%s1898_s5] sm:$0xff] }
  0x1b   :  { %396 = vperm.xlu0 %1157, %v376_v32   ;;  %421 = vperm.xlu1 %1158, %v381_v33   ;;  %v897_v52 = vld [vmem:[%s1900_s7] sm:$0xff] }
  0x1c   :  { %1112 = vmatmul.mubr.msk.f32.gmra.mxu0 %vm60_vm1, %v1462_v34  ;;  %1124 = vmatmul.mubr.msk.f32.gmra.mxu1 %vm60_vm1, %v1462_v34 }
  0x1d   :  { %198 = vmatprep.mubr.f32.mxu0 %v1277_v21  ;;  %323 = vmatprep.mubr.f32.mxu1 %v1277_v21 }
  0x1f   :  { %471 = vperm.xlu0 %1157, %v456_v35   ;;  %391 = vperm.xlu1 %1158, %v375_v36  }
  0x20   :  { %1113 = vmatmul.mubr.msk.f32.gmra.mxu0 %vm60_vm1, %v55_v37  ;;  %1125 = vmatmul.mubr.msk.f32.gmra.mxu1 %vm60_vm1, %v55_v37 }
  0x21   :  { %204 = vmatprep.mubr.f32.mxu0 %v1277_v21  ;;  %329 = vmatprep.mubr.f32.mxu1 %v1277_v21 }
  0x23   :  { %416 = vperm.xlu0 %1157, %v380_v38   ;;  %466 = vperm.xlu1 %1158, %v455_v39  }
  0x24   :  { %1114 = vmatmul.mubr.msk.f32.gmra.mxu0 %vm60_vm1, %v56_v40  ;;  %1126 = vmatmul.mubr.msk.f32.gmra.mxu1 %vm60_vm1, %v56_v40 }
  0x25   :  { %210 = vmatprep.mubr.f32.mxu0 %v1277_v21  ;;  %335 = vmatprep.mubr.f32.mxu1 %v1277_v21 }
  0x27   :  { %386 = vperm.xlu0 %1157, %v374_v41   ;;  %411 = vperm.xlu1 %1158, %v379_v42  }
  0x28   :  { %1115 = vmatmul.mubr.msk.f32.gmra.mxu0 %vm60_vm1, %v57_v43  ;;  %1127 = vmatmul.mubr.msk.f32.gmra.mxu1 %vm60_vm1, %v57_v43 }
  0x29   :  { %216 = vmatprep.mubr.f32.mxu0 %v1277_v21  ;;  %341 = vmatprep.mubr.f32.mxu1 %v1277_v21 }
  0x2b   :  { %461 = vperm.xlu0 %1157, %v454_v44   ;;  %833 = vperm.xlu1 %1158, %v810_v45  }
  0x2c   :  { %1116 = vmatmul.mubr.msk.f32.gmra.mxu0 %vm60_vm1, %v58_v46  ;;  %1128 = vmatmul.mubr.msk.f32.gmra.mxu1 %vm60_vm1, %v58_v46 }
  0x2d   :  { %222 = vmatprep.mubr.f32.mxu0 %v1277_v21  ;;  %347 = vmatprep.mubr.f32.mxu1 %v1277_v21 }
  0x2f   :  { %828 = vperm.xlu0 %1157, %v809_v47   ;;  %823 = vperm.xlu1 %1158, %v808_v48  }
  0x30   :  { %1117 = vmatmul.mubr.msk.f32.gmra.mxu0 %vm60_vm1, %v59_v49  ;;  %1129 = vmatmul.mubr.msk.f32.gmra.mxu1 %vm60_vm1, %v59_v49 }
  0x31   :  { %640 = vmatprep.mubr.f32.mxu0 %v1277_v21  ;;  %735 = vmatprep.mubr.f32.mxu1 %v1277_v21 }
  0x33   :  { %818 = vperm.xlu0 %1157, %v807_v50   ;;  %813 = vperm.xlu1 %1158, %v806_v51  }
  0x37   :  { %900 = vperm.xlu0 %1157, %v897_v52  }
  0x8a   :  { %v1544_v53 = vpop.permute.xlu0 %406  ;;  %v1546_v54 = vpop.permute.xlu1 %481 }
  0x8e   :  { %v1548_v55 = vpop.permute.xlu0 %431  ;;  %v1550_v56 = vpop.permute.xlu1 %401 }
  0x92   :  { %v1552_v57 = vpop.permute.xlu0 %426  ;;  %v1554_v58 = vpop.permute.xlu1 %476 }
  0x96   :  { %v1556_v59 = vpop.permute.xlu0 %396  ;;  %v1558_v60 = vpop.permute.xlu1 %421 }
  0x9a   :  { %v1560_v61 = vpop.permute.xlu0 %471  ;;  %v392_v62 = vpop.permute.xlu1 %391 }
  0x9e   :  { %v417_v63 = vpop.permute.xlu0 %416  ;;  %v1562_v0 = vpop.permute.xlu1 %466 }
  0xa2   :  { %v387_v1 = vpop.permute.xlu0 %386  ;;  %v412_v6 = vpop.permute.xlu1 %411 }
  0xa6   :  { %v1570_v10 = vpop.permute.xlu0 %461 }
  0xcc   :  { %v170_v2 = vpop.f32.mrf.mxu0  ;;  %v1564_v3 = vpop.f32.mrf.mxu1 }
  0xcd   :  { %vm354_vm2 = vcmp.ge.f32.partialorder %v170_v2, 0.0  ;;  %vm356_vm6 = vcmp.ge.f32.partialorder %v1564_v3, 0.0 }
  0xce   :  { %v172_v4 = vpop.f32.mrf.mxu0  ;;  %v1566_v5 = vpop.f32.mrf.mxu1  ;;  %v434_v7 = vsel %vm354_vm2, %v387_v1, %v412_v6  ;;  %v1583_v32 = vsel %vm356_vm6, %v387_v1, %v412_v6 }
  0xcf   :  { %vm355_vm3 = vcmp.ge.f32.partialorder %v172_v4, 0.0  ;;  %v484_v14 = vsub.f32 %v1570_v10, %v434_v7  ;;  %vm357_vm8 = vcmp.ge.f32.partialorder %v1566_v5, 0.0  ;;  %v486_v42 = vsub.f32 %v1570_v10, %v1583_v32 }
  0xd0   :  { %v176_v8 = vpop.f32.mrf.mxu0  ;;  %v1568_v9 = vpop.f32.mrf.mxu1  ;;  %v435_v11 = vsel %vm355_vm3, %v387_v1, %v412_v6  ;;  %v1597_v43 = vsel %vm357_vm8, %v387_v1, %v412_v6 }
  0xd1   :  { %vm358_vm4 = vcmp.ge.f32.partialorder %v176_v8, 0.0  ;;  %v485_v15 = vsub.f32 %v1570_v10, %v435_v11  ;;  %v504_v26 = vmul.f32 %v484_v14, %v170_v2  ;;  %vm360_vm10 = vcmp.ge.f32.partialorder %v1568_v9, 0.0 }
  0xd2   :  { %v178_v12 = vpop.f32.mrf.mxu0  ;;  %v1572_v13 = vpop.f32.mrf.mxu1  ;;  %v438_v16 = vsel %vm358_vm4, %v392_v62, %v417_v63  ;;  %v1600_v47 = vsel %vm360_vm10, %v392_v62, %v417_v63 }
  0xd3   :  { %vm359_vm5 = vcmp.ge.f32.partialorder %v178_v12, 0.0  ;;  %v488_v19 = vsub.f32 %v1562_v0, %v438_v16  ;;  %v505_v27 = vmul.f32 %v485_v15, %v172_v4  ;;  %v524_v37 = vmul.f32 1.442695, %v504_v26 }
  0xd4   :  { %v182_v17 = vpop.f32.mrf.mxu0  ;;  %v1576_v18 = vpop.f32.mrf.mxu1  ;;  %v439_v22 = vsel %vm359_vm5, %v392_v62, %v417_v63  ;;  %vm361_vm11 = vcmp.ge.f32.partialorder %v1572_v13, 0.0 }
  0xd5   :  { %v489_v29 = vsub.f32 %v1562_v0, %v439_v22  ;;  %vm362_vm7 = vcmp.ge.f32.partialorder %v182_v17, 0.0  ;;  %v508_v35 = vmul.f32 %v488_v19, %v176_v8  ;;  %v526_v38 = vmul.f32 1.442695, %v505_v27 }
  0xd6   :  { %v184_v23 = vpop.f32.mrf.mxu0  ;;  %v1580_v25 = vpop.f32.mrf.mxu1  ;;  %v442_v36 = vsel %vm362_vm7, %v1556_v59, %v1558_v60  ;;  %vm364_vm12 = vcmp.ge.f32.partialorder %v1576_v18, 0.0  ;;  %v1602_v48 = vsel %vm361_vm11, %v392_v62, %v417_v63  ;;  %1159 = vpow2.f32 %v524_v37 }
  0xd7   :  { %vm363_vm9 = vcmp.ge.f32.partialorder %v184_v23, 0.0  ;;  %v509_v39 = vmul.f32 %v489_v29, %v178_v12  ;;  %v492_v44 = vsub.f32 %v1560_v61, %v442_v36  ;;  %v532_v46 = vmul.f32 1.442695, %v508_v35 }
  0xd8   :  { %v188_v30 = vpop.f32.mrf.mxu0  ;;  %v1585_v33 = vpop.f32.mrf.mxu1  ;;  %v443_v40 = vsel %vm363_vm9, %v1556_v59, %v1558_v60  ;;  %v444_v49 = vsel %vm364_vm12, %v1556_v59, %v1558_v60  ;;  %1161 = vpow2.f32 %v526_v38  ;;  %vm365_vm14 = vcmp.ge.f32.partialorder %v1580_v25, 0.0 }
  0xd9   :  { %vm366_vm13 = vcmp.ge.f32.partialorder %v188_v30, 0.0  ;;  %v493_v50 = vsub.f32 %v1560_v61, %v443_v40  ;;  %v534_v52 = vmul.f32 1.442695, %v509_v39  ;;  %v491_v62 = vsub.f32 %v1562_v0, %v1602_v48 }
  0xda   :  { %v190_v41 = vpop.f32.mrf.mxu0  ;;  %v315_v45 = vpop.f32.mrf.mxu1  ;;  %v446_v51 = vsel %vm366_vm13, %v1550_v56, %v1552_v57  ;;  %v512_v63 = vmul.f32 %v492_v44, %v182_v17  ;;  %vm368_vm15 = vcmp.ge.f32.partialorder %v1585_v33, 0.0  ;;  %1163 = vpow2.f32 %v532_v46 }
  0xdb   :  { %v496_v1 = vsub.f32 %v1554_v58, %v446_v51  ;;  %vm367_vm2 = vcmp.ge.f32.partialorder %v190_v41, 0.0  ;;  %v494_v6 = vsub.f32 %v1560_v61, %v444_v49  ;;  %vm369_vm3 = vcmp.ge.f32.partialorder %v315_v45, 0.0 }
  0xdc   :  { %v194_v2 = vpop.f32.mrf.mxu0  ;;  %v319_v4 = vpop.f32.mrf.mxu1  ;;  %v447_v7 = vsel %vm367_vm2, %v1550_v56, %v1552_v57  ;;  %v513_v8 = vmul.f32 %v493_v50, %v184_v23  ;;  %v445_v11 = vsel %vm365_vm14, %v1556_v59, %v1558_v60  ;;  %v449_v14 = vsel %vm369_vm3, %v1550_v56, %v1552_v57 }
  0xdd   :  { %v497_v12 = vsub.f32 %v1554_v58, %v447_v7  ;;  %1165 = vpow2.f32 %v534_v52  ;;  %v516_v15 = vmul.f32 %v496_v1, %v188_v30  ;;  %v448_v16 = vsel %vm368_vm15, %v1550_v56, %v1552_v57 }
  0xde   :  { %vm370_vm4 = vcmp.ge.f32.partialorder %v194_v2, 0.0  ;;  %v196_v17 = vpop.f32.mrf.mxu0  ;;  %v540_v19 = vmul.f32 1.442695, %v512_v63  ;;  %vm372_vm5 = vcmp.ge.f32.partialorder %v319_v4, 0.0  ;;  %v321_v26 = vpop.f32.mrf.mxu1  ;;  %v495_v59 = vsub.f32 %v1560_v61, %v445_v11 }
  0xdf   :  { %v517_v22 = vmul.f32 %v497_v12, %v190_v41  ;;  %v450_v23 = vsel %vm370_vm4, %v1544_v53, %v1548_v55  ;;  %v499_v60 = vsub.f32 %v1554_v58, %v449_v14  ;;  %v452_v29 = vsel %vm372_vm5, %v1544_v53, %v1548_v55 }
  0xe0   :  { %v500_v27 = vsub.f32 %v1546_v54, %v450_v23  ;;  %v542_v30 = vmul.f32 1.442695, %v513_v8  ;;  %v498_v56 = vsub.f32 %v1554_v58, %v448_v16  ;;  %v502_v57 = vsub.f32 %v1546_v54, %v452_v29 }
  0xe1   :  { %vm371_vm6 = vcmp.ge.f32.partialorder %v196_v17, 0.0  ;;  %v548_v35 = vmul.f32 1.442695, %v516_v15  ;;  %vm373_vm7 = vcmp.ge.f32.partialorder %v321_v26, 0.0  ;;  %v550_v61 = vmul.f32 1.442695, %v517_v22 }
  0xe2   :  { %v520_v36 = vmul.f32 %v500_v27, %v194_v2  ;;  %v451_v37 = vsel %vm371_vm6, %v1544_v53, %v1548_v55  ;;  %v522_v38 = vmul.f32 %v502_v57, %v319_v4  ;;  %v453_v40 = vsel %vm373_vm7, %v1544_v53, %v1548_v55 }
  0xe3   :  { %v501_v39 = vsub.f32 %v1546_v54, %v451_v37  ;;  %1167 = vpow2.f32 %v540_v19  ;;  %v519_v41 = vmul.f32 %v499_v60, %v315_v45  ;;  %v503_v58 = vsub.f32 %v1546_v54, %v453_v40  ;;  %v1642_v50 = vpop.eup %1159 }
  0xe4   :  { %v556_v44 = vmul.f32 1.442695, %v520_v36  ;;  %v490_v46 = vsub.f32 %v1562_v0, %v1600_v47  ;;  %1169 = vpow2.f32 %v542_v30  ;;  %v518_v48 = vmul.f32 %v498_v56, %v1585_v33 }
  0xe5   :  { %v521_v49 = vmul.f32 %v501_v39, %v196_v17  ;;  %v487_v51 = vsub.f32 %v1570_v10, %v1597_v43  ;;  %v515_v52 = vmul.f32 %v495_v59, %v1580_v25  ;;  %1171 = vpow2.f32 %v548_v35  ;;  %v1647_v55 = vpop.eup %1161 }
  0xe6   :  { %v523_v53 = vmul.f32 %v503_v58, %v321_v26  ;;  %v514_v54 = vmul.f32 %v494_v6, %v1576_v18  ;;  %1173 = vpow2.f32 %v550_v61  ;;  %v560_v45 = vmul.f32 1.442695, %v522_v38 }
  0xe7   :  { %v558_v0 = vmul.f32 1.442695, %v521_v49  ;;  %v511_v47 = vmul.f32 %v491_v62, %v1572_v13  ;;  %v554_v33 = vmul.f32 1.442695, %v519_v41  ;;  %1175 = vpow2.f32 %v556_v44  ;;  %v1651_v2 = vpop.eup %1163 }
  0xe8   :  { %v562_v1 = vmul.f32 1.442695, %v523_v53  ;;  %v510_v43 = vmul.f32 %v490_v46, %v1568_v9  ;;  %v552_v63 = vmul.f32 1.442695, %v518_v48  ;;  %v507_v25 = vmul.f32 %v487_v51, %v1566_v5 }
  0xe9   :  { %1177 = vpow2.f32 %v558_v0  ;;  %v546_v4 = vmul.f32 1.442695, %v515_v52  ;;  %v506_v13 = vmul.f32 %v486_v42, %v1564_v3  ;;  %v544_v18 = vmul.f32 1.442695, %v514_v54 }
  0xea   :  { %1179 = vpow2.f32 %v562_v1  ;;  %v1655_v7 = vpop.eup %1165  ;;  %v538_v62 = vmul.f32 1.442695, %v511_v47  ;;  %v536_v6 = vmul.f32 1.442695, %v510_v43  ;;  %v530_v9 = vmul.f32 1.442695, %v507_v25 }
  0xeb   :  { %1181 = vpow2.f32 %v560_v45  ;;  %v528_v8 = vmul.f32 1.442695, %v506_v13  ;;  %v834_v45 = vpop.permute.xlu1 %833 }
  0xec   :  { %1183 = vpow2.f32 %v554_v33 }
  0xed   :  { %1185 = vpow2.f32 %v552_v63 }
  0xee   :  { %1187 = vpow2.f32 %v546_v4 }
  0xef   :  { %1189 = vpow2.f32 %v544_v18  ;;  %v824_v25 = vpop.permute.xlu1 %823 }
  0xf0   :  { %1191 = vpow2.f32 %v538_v62  ;;  %v1661_v5 = vpop.eup %1167  ;;  %v829_v62 = vpop.permute.xlu0 %828 }
  0xf1   :  { %1193 = vpow2.f32 %v536_v6  ;;  %v1663_v11 = vpop.eup %1169 }
  0xf2   :  { %1195 = vpow2.f32 %v530_v9  ;;  %v1665_v12 = vpop.eup %1171 }
  0xf3   :  { %1197 = vpow2.f32 %v528_v8  ;;  %v1667_v3 = vpop.eup %1173 }
  0xf4   :  { %v1669_v10 = vpop.eup %1175 }
  0xf6   :  { %v1671_v32 = vpop.eup %1177 }
  0xf7   :  { %v1673_v42 = vpop.eup %1179  ;;  %1130 = vmatprep.subr.msk.mxu0 %vm91_vm0, %v1671_v32 }
  0xf8   :  { %v1677_v14 = vpop.eup %1181  ;;  %1137 = vmatprep.subr.msk.mxu1 %vm91_vm0, %v1673_v42  ;;  %1131 = vmatpush1.msk.msra.mxu0 %vm91_vm0, %v1669_v10 }
  0xf9   :  { %v1683_v15 = vpop.eup %1183  ;;  %1138 = vmatpush1.msk.msra.mxu1 %vm91_vm0, %v1677_v14  ;;  %600 = vmatprep.subr.mxu0 %v1667_v3 }
  0xfa   :  { %v1688_v16 = vpop.eup %1185  ;;  %695 = vmatprep.subr.mxu1 %v1683_v15  ;;  %601 = vmatpush1.msra.mxu0 %v1665_v12 }
  0xfb   :  { %v1692_v17 = vpop.eup %1187  ;;  %696 = vmatpush1.msra.mxu1 %v1688_v16  ;;  %602 = vmatprep.subr.mxu0 %v1663_v11 }
  0xfc   :  { %v1696_v19 = vpop.eup %1189  ;;  %697 = vmatprep.subr.mxu1 %v1692_v17  ;;  %603 = vmatpush1.msra.mxu0 %v1661_v5 }
  0xfd   :  { %v1700_v22 = vpop.eup %1191  ;;  %698 = vmatpush1.msra.mxu1 %v1696_v19  ;;  %604 = vmatprep.subr.mxu0 %v1655_v7 }
  0xfe   :  { %v1704_v23 = vpop.eup %1193  ;;  %699 = vmatprep.subr.mxu1 %v1700_v22  ;;  %605 = vmatpush1.msra.mxu0 %v1651_v2 }
  0xff   :  { %v1708_v26 = vpop.eup %1195  ;;  %700 = vmatpush1.msra.mxu1 %v1704_v23  ;;  %606 = vmatprep.subr.mxu0 %v1647_v55 }
 0x100   :  { %v1712_v59 = vpop.eup %1197  ;;  %701 = vmatprep.subr.mxu1 %v1708_v26  ;;  %607 = vmatpush1.msra.mxu0 %v1642_v50 }
 0x101   :  { %702 = vmatpush1.msra.mxu1 %v1712_v59  ;;  %1132 = vmatmul.mubr.msk.f32.vlgmr.msra.gmra.mxu0 %vm60_vm1, %v1392_v20 }
 0x102   :  { %1139 = vmatmul.mubr.msk.f32.vlgmr.msra.gmra.mxu1 %vm60_vm1, %v1392_v20  ;;  %646 = vmatprep.mubr.f32.mxu0 %v1277_v21  ;;  %v1747_v20 = vpop.f32.mrf.mxu0 }
 0x103   :  { %741 = vmatprep.mubr.f32.mxu1 %v1277_v21 }
 0x105   :  { %1133 = vmatmul.mubr.msk.f32.gmra.mxu0 %vm60_vm1, %v1411_v24 }
 0x106   :  { %1140 = vmatmul.mubr.msk.f32.gmra.mxu1 %vm60_vm1, %v1411_v24  ;;  %652 = vmatprep.mubr.f32.mxu0 %v1277_v21  ;;  %v1749_v24 = vpop.f32.mrf.mxu1 }
 0x107   :  { %747 = vmatprep.mubr.f32.mxu1 %v1277_v21 }
 0x109   :  { %1134 = vmatmul.mubr.msk.f32.gmra.mxu0 %vm60_vm1, %v1428_v28 }
 0x10a   :  { %1141 = vmatmul.mubr.msk.f32.gmra.mxu1 %vm60_vm1, %v1428_v28  ;;  %658 = vmatprep.mubr.f32.mxu0 %v1277_v21  ;;  %v202_v28 = vpop.f32.mrf.mxu0 }
 0x10b   :  { %753 = vmatprep.mubr.f32.mxu1 %v1277_v21 }
 0x10c   :  { %v1753_v60 = vpop.f32.mrf.mxu0 }
 0x10d   :  { %1135 = vmatmul.mubr.msk.f32.gmra.mxu0 %vm60_vm1, %v1445_v31 }
 0x10e   :  { %1142 = vmatmul.mubr.msk.f32.gmra.mxu1 %vm60_vm1, %v1445_v31  ;;  %664 = vmatprep.mubr.f32.mxu0 %v1277_v21  ;;  %v1751_v31 = vpop.f32.mrf.mxu1  ;;  %v1757_v29 = vpop.f32.mrf.mxu0 }
 0x10f   :  { %759 = vmatprep.mubr.f32.mxu1 %v1277_v21 }
 0x110   :  { %v1755_v27 = vpop.f32.mrf.mxu1 }
 0x111   :  { %1136 = vmatmul.mubr.msk.f32.gmra.mxu0 %vm60_vm1, %v1462_v34 }
 0x112   :  { %1143 = vmatmul.mubr.msk.f32.gmra.mxu1 %vm60_vm1, %v1462_v34  ;;  %982 = vmatprep.mubr.f32.mxu0 %v1277_v21  ;;  %v1759_v30 = vpop.f32.mrf.mxu1  ;;  %v1761_v34 = vpop.f32.mrf.mxu0 }
 0x113   :  { %1053 = vmatprep.mubr.f32.mxu1 %v1277_v21 }
 0x114   :  { %v1763_v56 = vpop.f32.mrf.mxu1  ;;  %v1765_v21 = vpop.f32.mrf.mxu0 }
 0x116   :  { %v1767_v57 = vpop.f32.mrf.mxu1  ;;  %v1769_v35 = vpop.f32.mrf.mxu0 }
 0x118   :  { %v1771_v36 = vpop.f32.mrf.mxu1  ;;  %v1773_v37 = vpop.f32.mrf.mxu0 }
 0x11a   :  { %v1775_v61 = vpop.f32.mrf.mxu1  ;;  %v1777_v38 = vpop.f32.mrf.mxu0 }
 0x11c   :  { %v1779_v39 = vpop.f32.mrf.mxu1  ;;  %v1781_v40 = vpop.f32.mrf.mxu0 }
 0x11e   :  { %v1783_v41 = vpop.f32.mrf.mxu1 }
 0x1c1   :  { %v642_v44 = vpop.f32.mrf.mxu0 }
 0x1c2   :  { %v737_v58 = vpop.f32.mrf.mxu1  ;;  %1199 = vrcp.f32 %v642_v44 }
 0x1c3   :  { %v644_v46 = vpop.f32.mrf.mxu0 }
 0x1c4   :  { %v739_v48 = vpop.f32.mrf.mxu1  ;;  %1201 = vrcp.f32 %v644_v46 }
 0x1c5   :  { %v648_v49 = vpop.f32.mrf.mxu0 }
 0x1c6   :  { %v743_v51 = vpop.f32.mrf.mxu1  ;;  %1203 = vrcp.f32 %v648_v49  ;;  %v814_v49 = vpop.permute.xlu1 %813 }
 0x1c7   :  { %v650_v52 = vpop.f32.mrf.mxu0 }
 0x1c8   :  { %v745_v53 = vpop.f32.mrf.mxu1  ;;  %1205 = vrcp.f32 %v650_v52 }
 0x1c9   :  { %v654_v54 = vpop.f32.mrf.mxu0 }
 0x1ca   :  { %v749_v0 = vpop.f32.mrf.mxu1  ;;  %1207 = vrcp.f32 %v654_v54  ;;  %v1791_v54 = vadd.f32 %v814_v49, %v202_v28 }
 0x1cb   :  { %v656_v47 = vpop.f32.mrf.mxu0 }
 0x1cc   :  { %1209 = vrcp.f32 %v656_v47  ;;  %v751_v33 = vpop.f32.mrf.mxu1  ;;  %1904 = vst [vmem:[#allocation5_spill] sm:$0xff] %v1791_v54 }
 0x1cd   :  { %1211 = vrcp.f32 %v751_v33  ;;  %v660_v1 = vpop.f32.mrf.mxu0 }
 0x1ce   :  { %1213 = vrcp.f32 %v660_v1  ;;  %v755_v43 = vpop.f32.mrf.mxu1  ;;  %v819_v1 = vpop.permute.xlu0 %818 }
 0x1cf   :  { %1215 = vrcp.f32 %v755_v43  ;;  %v662_v63 = vpop.f32.mrf.mxu0  ;;  %v1200_v9 = vpop.eup %1199  ;;  %v1796_v43 = vadd.f32 %v814_v49, %v1747_v20  ;;  %v1805_v28 = vadd.f32 %v819_v1, %v1753_v60  ;;  %v1812_v20 = vadd.f32 %v824_v25, %v1761_v34 }
 0x1d0   :  { %1217 = vrcp.f32 %v662_v63  ;;  %v757_v4 = vpop.f32.mrf.mxu1  ;;  %v1799_v63 = vadd.f32 %v814_v49, %v1749_v24  ;;  %v1815_v24 = vadd.f32 %v824_v25, %v1765_v21  ;;  %v1821_v60 = vadd.f32 %v829_v62, %v1771_v36 }
 0x1d1   :  { %1219 = vrcp.f32 %v757_v4  ;;  %v666_v13 = vpop.f32.mrf.mxu0  ;;  %v1785_v44 = vpop.eup %1201  ;;  %1907 = vst [vmem:[#allocation8_spill] sm:$0xff] %v1805_v28  ;;  %v1827_v34 = vadd.f32 %v819_v1, %v1755_v27  ;;  %v854_v21 = vadd.f32 %v834_v45, %v1779_v39  ;;  %v864_v27 = vmax.f32 %v1812_v20, 0.0 }
 0x1d2   :  { %1221 = vrcp.f32 %v666_v13  ;;  %v761_v18 = vpop.f32.mrf.mxu1  ;;  %1905 = vst [vmem:[#allocation6_spill] sm:$0xff] %v1799_v63  ;;  %v865_v39 = vmax.f32 %v1815_v24, 0.0 }
 0x1d3   :  { %1223 = vrcp.f32 %v761_v18  ;;  %v668_v6 = vpop.f32.mrf.mxu0  ;;  %v1787_v46 = vpop.eup %1203  ;;  %v852_v18 = vadd.f32 %v834_v45, %v1777_v38 }
 0x1d4   :  { %1225 = vrcp.f32 %v668_v6  ;;  %v763_v8 = vpop.f32.mrf.mxu1 }
 0x1d5   :  { %1227 = vrcp.f32 %v763_v8  ;;  %v1789_v52 = vpop.eup %1205  ;;  %v853_v8 = vadd.f32 %v834_v45, %v1781_v40  ;;  %v847_v40 = vadd.f32 %v824_v25, %v1767_v57  ;;  %v872_v54 = vmax.f32 %v852_v18, 0.0 }
 0x1d6   :  { %1229 = vrcp.f32 %v749_v0  ;;  %v1802_v0 = vadd.f32 %v814_v49, %v1751_v31  ;;  %v787_v18 = vmul.f32 %v1785_v44, %v1647_v55 }
 0x1d7   :  { %1231 = vrcp.f32 %v745_v53  ;;  %v1793_v47 = vpop.eup %1207  ;;  %v1808_v53 = vadd.f32 %v819_v1, %v1757_v29  ;;  %v849_v29 = vadd.f32 %v829_v62, %v1773_v37  ;;  %v1835_v37 = vadd.f32 %v819_v1, %v1759_v30 }
 0x1d8   :  { %1233 = vrcp.f32 %v743_v51  ;;  %1906 = vst [vmem:[#allocation7_spill] sm:$0xff] %v1802_v0  ;;  %v874_v1 = vmax.f32 %v854_v21, 0.0  ;;  %v873_v63 = vmax.f32 %v853_v8, 0.0 }
 0x1d9   :  { %v1210_v33 = vpop.eup %1209  ;;  %1235 = vrcp.f32 %v739_v48  ;;  %v1818_v48 = vadd.f32 %v829_v62, %v1769_v35  ;;  %v855_v35 = vadd.f32 %v834_v45, %v1783_v41  ;;  %v869_v36 = vmax.f32 %v849_v29, 0.0 }
 0x1da   :  { %v1212_v4 = vpop.eup %1211  ;;  %1237 = vrcp.f32 %v737_v58  ;;  %v851_v58 = vadd.f32 %v829_v62, %v1775_v61  ;;  %v1838_v61 = vadd.f32 %v824_v25, %v1763_v56  ;;  %v870_v62 = vmax.f32 %v1821_v60, 0.0 }
 0x1db   :  { %v1214_v51 = vpop.eup %1213  ;;  %v868_v41 = vmax.f32 %v1818_v48, 0.0  ;;  %v875_v56 = vmax.f32 %v855_v35, 0.0  ;;  %v786_v25 = vmul.f32 %v1200_v9, %v1642_v50 }
 0x1dc   :  { %v1216_v31 = vpop.eup %1215  ;;  %v871_v13 = vmax.f32 %v851_v58, 0.0  ;;  %v798_v58 = vmul.f32 %v1214_v51, %v1665_v12  ;;  %v794_v12 = vmul.f32 %v1793_v47, %v1661_v5  ;;  %v1908_v51 = vmax.f32 %v1808_v53, 0.0 }
 0x1dd   :  { %v1218_v6 = vpop.eup %1217 }
 0x1de   :  { %v1220_v49 = vpop.eup %1219  ;;  %v799_v57 = vmul.f32 %v1218_v6, %v1667_v3  ;;  %v790_v3 = vmul.f32 %v1787_v46, %v1651_v2  ;;  %v867_v2 = vmax.f32 %v847_v40, 0.0  ;;  %v889_v46 = vmul.f32 %v868_v41, %v798_v58  ;;  %v876_v40 = vld [vmem:[%s1899_s6] sm:$0xff]  ;;  %s1279_s6 = smov [#allocation2]  }
 0x1df   :  { %v1222_v38 = vpop.eup %1221  ;;  %v801_v29 = vmul.f32 %v1220_v49, %v1683_v15  ;;  %v1909_v8 = vld [vmem:[#allocation7_spill] sm:$0xff]  ;;  %s1098_s12 = sshll.u32 %s1279_s6, 4  ;;  %s1099_s12 = int_to_ptr.vmem [resolvable:$true] %s1098_s12 }
 0x1e0   :  { %v1224_v45 = vpop.eup %1223  ;;  %v802_v28 = vmul.f32 %v1222_v38, %v1669_v10  ;;  %v890_v44 = vmul.f32 %v869_v36, %v799_v57  ;;  %v859_v35 = vmax.f32 %v1909_v8, 0.0  ;;  %v1910_v36 = vld [vmem:[#allocation8_spill] sm:$0xff]  ;;  %s1255_s13 = scalar_lea.vmem %s1099_s12, 512  ;;  %p1260_p1 = scmp.lt.s32.totalorder %s1099_s12, %s1099_s12 }
 0x1e1   :  { %v1226_v30 = vpop.eup %1225  ;;  %v804_v24 = vmul.f32 %v1224_v45, %v1677_v14  ;;  %v795_v14 = vmul.f32 %v1210_v33, %v1663_v11  ;;  %v791_v11 = vmul.f32 %v1789_v52, %v1655_v7  ;;  %v863_v7 = vmax.f32 %v1835_v37, 0.0  ;;  %v901_v45 = vpop.permute.xlu0 %900  ;;  %p1256_p0 = scmp.ne.s32.totalorder %s1099_s12, %s1255_s13  ;;  %p1261_p2 = scmp.lt.s32.totalorder %s1255_s13, %s1255_s13 }
 0x1e2   :  { %v1228_v0 = vpop.eup %1227  ;;  %v803_v20 = vmul.f32 %v1226_v30, %v1671_v32  ;;  %v800_v32 = vmul.f32 %v1216_v31, %v1688_v16  ;;  %v893_v6 = vmul.f32 %v872_v54, %v802_v28  ;;  %v866_v54 = vmax.f32 %v1838_v61, 0.0  ;;  %v1912_v61 = vld [vmem:[#allocation6_spill] sm:$0xff] }
 0x1e3   :  { %v1230_v48 = vpop.eup %1229  ;;  %v805_v60 = vmul.f32 %v1228_v0, %v1673_v42  ;;  %v797_v42 = vmul.f32 %v1212_v4, %v1692_v17  ;;  %v895_v55 = vmul.f32 %v874_v1, %v804_v24  ;;  %v892_v17 = vmul.f32 %v871_v13, %v801_v29  ;;  %p1262_p3 = por %p1261_p2, %p1260_p1 }
 0x1e4   :  { %v1232_v10 = vpop.eup %1231  ;;  %v894_v21 = vmul.f32 %v873_v63, %v803_v20  ;;  %v796_v16 = vmul.f32 %v1230_v48, %v1696_v19  ;;  %v891_v47 = vmul.f32 %v870_v62, %v800_v32  ;;  %v886_v19 = vmul.f32 %v865_v39, %v795_v14 }
 0x1e5   :  { %v1234_v50 = vpop.eup %1233  ;;  %v896_v9 = vmul.f32 %v875_v56, %v805_v60  ;;  %v793_v5 = vmul.f32 %v1232_v10, %v1700_v22  ;;  %v888_v52 = vmul.f32 %v867_v2, %v797_v42  ;;  %v885_v4 = vmul.f32 %v864_v27, %v794_v12  ;;  %v1913_v27 = vld [vmem:[#allocation5_spill] sm:$0xff]  ;;  %p1263_p4 = pnand %p1262_p3, %p1256_p0 }
 0x1e6   :  { %v1236_v15 = vpop.eup %1235  ;;  %1144 = vmatprep.subr.msk.mxu0 %vm91_vm0, %v894_v21  ;;  %v792_v63 = vmul.f32 %v1234_v50, %v1704_v23  ;;  %v862_v28 = vmax.f32 %v1827_v34, 0.0  ;;  %v887_v22 = vmul.f32 %v866_v54, %v796_v16  ;;  %v882_v13 = vmul.f32 %v1908_v51, %v791_v11 }
 0x1e7   :  { %v1238_v33 = vpop.eup %1237  ;;  %1147 = vmatprep.subr.msk.mxu1 %vm91_vm0, %v896_v9  ;;  %1145 = vmatpush1.msk.msra.mxu0 %vm91_vm0, %v893_v6  ;;  %v789_v0 = vmul.f32 %v1236_v15, %v1708_v26  ;;  %v856_v23 = vmax.f32 %v1796_v43, 0.0  ;;  %v884_v49 = vmul.f32 %v863_v7, %v793_v5  ;;  %v1911_v37 = vmax.f32 %v1910_v36, 0.0 }
 0x1e8   :  { %1148 = vmatpush1.msk.msra.mxu1 %vm91_vm0, %v895_v55  ;;  %942 = vmatprep.subr.mxu0 %v890_v44  ;;  %v788_v31 = vmul.f32 %v1238_v33, %v1712_v59  ;;  %v858_v34 = vmax.f32 %v1912_v61, 0.0  ;;  %v883_v38 = vmul.f32 %v862_v28, %v792_v63  ;;  %v1914_v53 = vmax.f32 %v1913_v27, 0.0 }
 0x1e9   :  { %1013 = vmatprep.subr.mxu1 %v892_v17  ;;  %943 = vmatpush1.msra.mxu0 %v889_v46  ;;  %v881_v26 = vmul.f32 %v1911_v37, %v790_v3  ;;  %v880_v59 = vmul.f32 %v859_v35, %v789_v0  ;;  %v877_v43 = vmul.f32 %v856_v23, %v786_v25 }
 0x1ea   :  { %1014 = vmatpush1.msra.mxu1 %v891_v47  ;;  %944 = vmatprep.subr.mxu0 %v886_v19  ;;  %v878_v39 = vmul.f32 %v1914_v53, %v787_v18  ;;  %v879_v41 = vmul.f32 %v858_v34, %v788_v31 }
 0x1eb   :  { %1015 = vmatprep.subr.mxu1 %v888_v52  ;;  %945 = vmatpush1.msra.mxu0 %v885_v4 }
 0x1ec   :  { %1016 = vmatpush1.msra.mxu1 %v887_v22  ;;  %946 = vmatprep.subr.mxu0 %v882_v13 }
 0x1ed   :  { %1017 = vmatprep.subr.mxu1 %v884_v49  ;;  %947 = vmatpush1.msra.mxu0 %v881_v26 }
 0x1ee   :  { %1018 = vmatpush1.msra.mxu1 %v883_v38  ;;  %948 = vmatprep.subr.mxu0 %v878_v39 }
 0x1ef   :  { %1019 = vmatprep.subr.mxu1 %v880_v59  ;;  %949 = vmatpush1.msra.mxu0 %v877_v43 }
 0x1f0   :  { %1020 = vmatpush1.msra.mxu1 %v879_v41  ;;  %1146 = vmatmul.mubr.msk.f32.vlgmr.msra.gmra.mxu0 %vm60_vm1, %v876_v40 }
 0x1f1   :  { %1149 = vmatmul.mubr.msk.f32.vlgmr.msra.gmra.mxu1 %vm60_vm1, %v876_v40 }
 0x2b0   :  { %v984_v62 = vpop.f32.mrf.mxu0 }
 0x2b1   :  { %v985_v30 = vadd.f32 %v984_v62, %v901_v45  ;;  %v1055_v1 = vpop.f32.mrf.mxu1 }
 0x2b2   :  { %v1056_v56 = vadd.f32 %v1055_v1, %v901_v45  ;;  %v986_v20 = vpop.f32.mrf.mxu0 }
 0x2b3   :  { %v1150_v24 = vmul.f32 -1.442695, %v985_v30  ;;  %v987_v57 = vadd.f32 %v986_v20, %v901_v45  ;;  %v1057_v25 = vpop.f32.mrf.mxu1 }
 0x2b4   :  { %v1152_v48 = vmul.f32 -1.442695, %v1056_v56  ;;  %v1058_v60 = vadd.f32 %v1057_v25, %v901_v45 }
 0x2b5   :  { %1239 = vpow2.f32 %v1150_v24  ;;  %v1151_v29 = vmul.f32 -1.442695, %v987_v57 }
 0x2b6   :  { %1241 = vpow2.f32 %v1152_v48  ;;  %v1153_v58 = vmul.f32 -1.442695, %v1058_v60 }
 0x2b7   :  { %1243 = vpow2.f32 %v1151_v29 }
 0x2b8   :  { %1245 = vpow2.f32 %v1153_v58 }
 0x2c2   :  { %v1240_v18 = vpop.eup %1239 }
 0x2c3   :  { %v1242_v10 = vpop.eup %1241  ;;  %v1072_v21 = vadd.f32 1.0, %v1240_v18 }
 0x2c4   :  { %v1244_v32 = vpop.eup %1243  ;;  %v1074_v14 = vadd.f32 1.0, %v1242_v10 }
 0x2c5   :  { %v1246_v3 = vpop.eup %1245  ;;  %1247 = vrcp.f32 %v1072_v21  ;;  %v1073_v50 = vadd.f32 1.0, %v1244_v32 }
 0x2c6   :  { %1249 = vrcp.f32 %v1074_v14  ;;  %v1075_v9 = vadd.f32 1.0, %v1246_v3 }
 0x2c7   :  { %1251 = vrcp.f32 %v1073_v50 }
 0x2c8   :  { %1253 = vrcp.f32 %v1075_v9 }
 0x2d2   :  { %v1248_v6 = vpop.eup %1247 }
 0x2d3   :  { %v1250_v42 = vpop.eup %1249  ;;  %v1084_v12 = vmul.f32 %v1248_v6, %v985_v30 }
 0x2d4   :  { %v1252_v15 = vpop.eup %1251  ;;  %v1086_v55 = vmul.f32 %v1250_v42, %v1056_v56 }
 0x2d5   :  { %v1254_v44 = vpop.eup %1253  ;;  %1088 = vst [vmem:[#allocation2] sm:$0xff] %v1084_v12  ;;  %v1085_v16 = vmul.f32 %v1252_v15, %v987_v57 }
 0x2d6   :  { %1090 = vst [vmem:[#allocation2 + $0x10] sm:$0xff] %v1086_v55  ;;  %v1087_v11 = vmul.f32 %v1254_v44, %v1058_v60 }
 0x2d7   :  { %1089 = vst [vmem:[#allocation2 + $0x8] sm:$0xff] %v1085_v16 }
 0x2d8   :  { %1091 = vst [vmem:[#allocation2 + $0x18] sm:$0xff] %v1087_v11 }
 0x2d9   :  { %1266 = shalt.err (!%p1263_p4)
}
 0x2da   :  { %1101 = dma.vmem_to_hbm [thread:$0]  %s1099_s12, 512, %s1901_s8, [#allocation3]  }
 0x2db   :  { %1275 = dma.done.wait [#allocation3], 512  }
 0x2dc   :  { %1276 = vsyncadd [#allocation3], 4294966784 }
 0x2dd   :  { %1105 = vsyncpa [#allocation3], 1 }

</bundles_post_ra>
